<compile_context>
chip_gen: v7x
topology: tpu7x:2x2x1
jax: 0.10.0
libtpu: 0.0.40
codegen_flags: <defaults>
</compile_context>

<pallas_src>
import functools

import jax
import jax.numpy as jnp
from jax.experimental import pallas as pl
from jax.experimental.pallas import tpu as pltpu


def _round_up(n, m):
    return ((n + m - 1) // m) * m


# ---------------------------------------------------------------------------
# One-time parameter preparation (PyTorch nn.Linear layout -> fused TPU layout)
# ---------------------------------------------------------------------------
def prepare_params(w_i2h, b_i2h, w_i2o, b_i2o, input_size, dtype=jnp.float32):
    """w_i2h: (H, I+H), w_i2o: (O, I+H)  (PyTorch (out, in) layout).

    Returns:
      wx : (I, P)  fused [i2h | i2o] weights for the `input` operand
      wh : (P, P)  fused [i2h | i2o] weights for the `hidden` operand
                   (rows >= H are zero, columns >= H+O are zero)
      b  : (1, P)  fused bias
    where P = round_up(H + O, 128) so the kernel output slab is lane-dense.
    """
    H = w_i2h.shape[0]
    O = w_i2o.shape[0]
    I = input_size
    P = _round_up(H + O, 128)

    wx = jnp.concatenate([w_i2h[:, :I].T, w_i2o[:, :I].T], axis=1)   # (I, H+O)
    wh = jnp.concatenate([w_i2h[:, I:].T, w_i2o[:, I:].T], axis=1)   # (H, H+O)
    b = jnp.concatenate([b_i2h, b_i2o])[None, :]                     # (1, H+O)

    wx = jnp.pad(wx, ((0, 0), (0, P - (H + O)))).astype(dtype)       # (I, P)
    wh = jnp.pad(wh, ((0, P - H), (0, P - (H + O)))).astype(dtype)   # (P, P)
    b = jnp.pad(b, ((0, 0), (0, P - (H + O)))).astype(dtype)         # (1, P)
    return wx, wh, b


# ---------------------------------------------------------------------------
# Shared kernel math: fused result slab -> [ new_hidden | log_probs | zeros ]
# ---------------------------------------------------------------------------
def _packed_logsoftmax(y, is_logit, is_hidden):
    """y: (B, P). Columns flagged is_logit = logits, is_hidden = hidden pre-acts."""
    neg_inf = jnp.float32(-jnp.inf)
    m = jnp.max(jnp.where(is_logit, y, neg_inf), axis=-1, keepdims=True)
    e = jnp.exp(jnp.where(is_logit, y - m, neg_inf))
    lse = jnp.log(jnp.sum(e, axis=-1, keepdims=True))
    return jnp.where(is_logit, y - m - lse, jnp.where(is_hidden, y, 0.0))


def _masks(shape, hidden_size, output_size):
    col = jax.lax.broadcasted_iota(jnp.int32, shape, len(shape) - 1)
    is_logit = (col >= hidden_size) & (col < hidden_size + output_size)
    is_hidden = col < hidden_size
    return is_logit, is_hidden


# ---------------------------------------------------------------------------
# Single-step kernel (exact module forward semantics; prefer the sequence path
# for any loop over timesteps).
# ---------------------------------------------------------------------------
def _cell_kernel(x_ref, h_ref, wx_ref, wh_ref, b_ref, out_ref, *,
                 hidden_size, output_size):
    y = (jnp.dot(x_ref[...], wx_ref[...], preferred_element_type=jnp.float32)
         + jnp.dot(h_ref[...], wh_ref[...], preferred_element_type=jnp.float32)
         + b_ref[...].astype(jnp.float32))
    is_logit, is_hidden = _masks(y.shape, hidden_size, output_size)
    out_ref[...] = _packed_logsoftmax(y, is_logit, is_hidden)


def processname_classifier_forward(x, h, wx, wh, b, *, hidden_size, output_size):
    """x: (B, I), h: (B, H); (wx, wh, b) from prepare_params().

    Returns (log_probs (B, O), new_hidden (B, H))."""
    B = x.shape[0]
    H, O, P = hidden_size, output_size, wx.shape[1]
    Bp = _round_up(max(B, 1), 8)

    xp = jnp.pad(x.astype(wx.dtype), ((0, Bp - B), (0, 0)))          # (Bp, I)
    hp = jnp.pad(h.astype(wx.dtype), ((0, Bp - B), (0, P - H)))      # (Bp, P)

    vmem = pl.BlockSpec(memory_space=pltpu.MemorySpace.VMEM)
    packed = pl.pallas_call(
        functools.partial(_cell_kernel, hidden_size=H, output_size=O),
        out_shape=jax.ShapeDtypeStruct((Bp, P), jnp.float32),
        in_specs=[vmem, vmem, vmem, vmem, vmem],
        out_specs=vmem,
    )(xp, hp, wx, wh, b)

    return packed[:B, H:H + O], packed[:B, :H]


# ---------------------------------------------------------------------------
# Input projection: one large "parallel" matmul pass over the whole sequence
# (hoisted off the recurrence critical path).
# ---------------------------------------------------------------------------
def _proj_kernel(x_ref, wx_ref, b_ref, out_ref):
    out_ref[...] = (
        jnp.dot(x_ref[...], wx_ref[...], preferred_element_type=jnp.float32)
        + b_ref[...].astype(jnp.float32))


# ---------------------------------------------------------------------------
# Sequence kernel: time axis blocked (Tc steps per grid step), weights resident
# in VMEM, hidden carried in a resident output block, raw pre-activation carry.
# ---------------------------------------------------------------------------
def _seq_kernel(xproj_ref, h0_ref, wh_ref, out_ref, hcarry_ref, *,
                hidden_size, output_size, seq_len, t_block):
    @pl.when(pl.program_id(0) == 0)
    def _():
        hcarry_ref[...] = h0_ref[...]          # init the resident hidden carry

    # Masks hoisted out of the (unrolled) inner time loop.
    is_logit, is_hidden = _masks(h0_ref.shape, hidden_size, output_size)
    neg_inf = jnp.float32(-jnp.inf)
    needs_mask = (seq_len % t_block) != 0       # static Python bool
    t0 = pl.program_id(0) * t_block

    def step(t, h):
        # Recurrence critical path: one MXU pass + one add per step.
        y = xproj_ref[t] + jnp.dot(h, wh_ref[...],
                                   preferred_element_type=jnp.float32)
        # Log-softmax epilogue is off the carry path (overlaps next matmul).
        m = jnp.max(jnp.where(is_logit, y, neg_inf), axis=-1, keepdims=True)
        e = jnp.exp(jnp.where(is_logit, y - m, neg_inf))
        lse = jnp.log(jnp.sum(e, axis=-1, keepdims=True))
        out_ref[t] = jnp.where(is_logit, y - m - lse,
                               jnp.where(is_hidden, y, 0.0))
        if needs_mask:
            # Freeze the carry on padded (beyond seq_len) timesteps.
            y = jnp.where(t0 + t < seq_len, y, h)
        # Raw pre-activation carry: wh rows >= hidden_size are zero, so the
        # logit/pad columns are inert for the next step.
        return y

    hcarry_ref[...] = jax.lax.fori_loop(0, t_block, step, hcarry_ref[...],
                                        unroll=True)


def processname_classifier_sequence(xs, h0, wx, wh, b, *, hidden_size,
                                    output_size, t_block=16):
    """xs: (T, B, I), h0: (B, H). Runs the whole recurrence on-chip.

    Returns (log_probs (T, B, O), final_hidden (B, H))."""
    T, B, I = xs.shape
    H, O, P = hidden_size, output_size, wx.shape[1]
    Bp = _round_up(max(B, 1), 8)
    Tc = max(1, min(t_block, T))
    Tp = pl.cdiv(T, Tc) * Tc

    xsp = jnp.pad(xs.astype(wx.dtype),
                  ((0, Tp - T), (0, Bp - B), (0, 0)))                 # (Tp, Bp, I)
    h0p = jnp.pad(h0.astype(jnp.float32), ((0, Bp - B), (0, P - H)))  # (Bp, P)

    # ---- Pass 1: xproj = xs @ Wx + b, one big parallel matmul over all steps.
    xproj = pl.pallas_call(
        _proj_kernel,
        grid=(Tp // Tc,),
        out_shape=jax.ShapeDtypeStruct((Tp * Bp, P), jnp.float32),
        in_specs=[
            pl.BlockSpec((Tc * Bp, I), lambda t: (t, 0)),
            pl.BlockSpec((I, P), lambda t: (0, 0)),
            pl.BlockSpec((1, P), lambda t: (0, 0)),
        ],
        out_specs=pl.BlockSpec((Tc * Bp, P), lambda t: (t, 0)),
        compiler_params=pltpu.CompilerParams(dimension_semantics=("parallel",)),
    )(xsp.reshape(Tp * Bp, I), wx, b).reshape(Tp, Bp, P)

    # ---- Pass 2: serial recurrence, Tc timesteps per grid step.
    out, hfin = pl.pallas_call(
        functools.partial(_seq_kernel, hidden_size=H, output_size=O,
                          seq_len=T, t_block=Tc),
        grid=(Tp // Tc,),
        out_shape=(
            jax.ShapeDtypeStruct((Tp, Bp, P), jnp.float32),
            jax.ShapeDtypeStruct((Bp, P), jnp.float32),
        ),
        in_specs=[
            pl.BlockSpec((Tc, Bp, P), lambda t: (t, 0, 0)),  # xproj, streamed
            pl.BlockSpec((Bp, P), lambda t: (0, 0)),         # h0, fetched once
            pl.BlockSpec((P, P), lambda t: (0, 0)),          # wh, resident
        ],
        out_specs=(
            pl.BlockSpec((Tc, Bp, P), lambda t: (t, 0, 0)),  # per-block slab
            pl.BlockSpec((Bp, P), lambda t: (0, 0)),         # hidden carry
        ),
        compiler_params=pltpu.CompilerParams(dimension_semantics=("arbitrary",)),
    )(xproj, h0p, wh)

    return out[:T, :B, H:H + O], hfin[:B, :H]


# ---------------------------------------------------------------------------
# Pure-JAX reference
# ---------------------------------------------------------------------------
def _reference_step(x, h, w_i2h, b_i2h, w_i2o, b_i2o):
    comb = jnp.concatenate([x, h], axis=1)
    hid = comb @ w_i2h.T + b_i2h
    logits = comb @ w_i2o.T + b_i2o
    return jax.nn.log_softmax(logits, axis=1), hid


if __name__ == "__main__":
    B, INPUT, HIDDEN, OUTPUT = 2, 16, 32, 8
    T = 6

    key = jax.random.PRNGKey(0)
    kx, ks, k1, k2, k3, k4 = jax.random.split(key, 6)

    x = jax.random.normal(kx, (B, INPUT), dtype=jnp.float32)
    xs = jax.random.normal(ks, (T, B, INPUT), dtype=jnp.float32)
    h0 = jnp.zeros((B, HIDDEN), dtype=jnp.float32)            # initHidden per row

    # PyTorch nn.Linear-shaped parameters.
    w_i2h = 0.1 * jax.random.normal(k1, (HIDDEN, INPUT + HIDDEN), dtype=jnp.float32)
    b_i2h = 0.1 * jax.random.normal(k2, (HIDDEN,), dtype=jnp.float32)
    w_i2o = 0.1 * jax.random.normal(k3, (OUTPUT, INPUT + HIDDEN), dtype=jnp.float32)
    b_i2o = 0.1 * jax.random.normal(k4, (OUTPUT,), dtype=jnp.float32)

    # One-time fused-weight preparation (constant across steps).
    wx, wh, b = prepare_params(w_i2h, b_i2h, w_i2o, b_i2o, INPUT)

    # --- single step (module forward) ---
    out, new_h = processname_classifier_forward(
        x, h0, wx, wh, b, hidden_size=HIDDEN, output_size=OUTPUT)
    jax.block_until_ready((out, new_h))

    ref_out, ref_h = _reference_step(x, h0, w_i2h, b_i2h, w_i2o, b_i2o)
    assert jnp.allclose(out, ref_out, atol=1e-5), "log-softmax output mismatch"
    assert jnp.allclose(new_h, ref_h, atol=1e-5), "hidden output mismatch"

    # --- full sequence with the recurrence inside the kernel (blocked T,
    #     t_block=4 so the time-padding / carry-across-grid-steps path is used).
    seq_out, seq_h = processname_classifier_sequence(
        xs, h0, wx, wh, b, hidden_size=HIDDEN, output_size=OUTPUT, t_block=4)
    jax.block_until_ready((seq_out, seq_h))

    h_ref = h0
    ref_outs = []
    for t in range(T):
        o_t, h_ref = _reference_step(xs[t], h_ref, w_i2h, b_i2h, w_i2o, b_i2o)
        ref_outs.append(o_t)
    ref_outs = jnp.stack(ref_outs)
    assert jnp.allclose(seq_out, ref_outs, atol=1e-4), "sequence log-probs mismatch"
    assert jnp.allclose(seq_h, h_ref, atol=1e-4), "sequence final hidden mismatch"

    print("KERNEL_OK")
</pallas_src>

<mosaic_0001>
module attributes {stable_mosaic.version = 11 : i64} {
  func.func @_cell_kernel(%arg0: memref<8x16xf32, #tpu.memory_space<vmem>>, %arg1: memref<8x128xf32, #tpu.memory_space<vmem>>, %arg2: memref<16x128xf32, #tpu.memory_space<vmem>>, %arg3: memref<128x128xf32, #tpu.memory_space<vmem>>, %arg4: memref<1x128xf32, #tpu.memory_space<vmem>>, %arg5: memref<8x128xf32, #tpu.memory_space<vmem>>) attributes {dimension_semantics = [], scalar_prefetch = 0 : i64, scratch_operands = 0 : i64, tpu.core_type = #tpu.core_type<tc>} {
    %c0 = arith.constant 0 : index
    %c0_0 = arith.constant 0 : index
    %0 = vector.load %arg0[%c0, %c0_0] : memref<8x16xf32, #tpu.memory_space<vmem>>, vector<8x16xf32>
    %c0_1 = arith.constant 0 : index
    %c0_2 = arith.constant 0 : index
    %1 = vector.load %arg2[%c0_1, %c0_2] : memref<16x128xf32, #tpu.memory_space<vmem>>, vector<16x128xf32>
    %cst = arith.constant dense<0.000000e+00> : vector<8x128xf32>
    %2 = tpu.matmul %0, %1, %cst {dimension_numbers = #tpu.dot_dimension_numbers<[1], [0], [0], [1], [0, 0, 1, 1], [], []>} : vector<8x16xf32>, vector<16x128xf32>, vector<8x128xf32> -> vector<8x128xf32>
    %c0_3 = arith.constant 0 : index
    %c0_4 = arith.constant 0 : index
    %3 = vector.load %arg1[%c0_3, %c0_4] : memref<8x128xf32, #tpu.memory_space<vmem>>, vector<8x128xf32>
    %c0_5 = arith.constant 0 : index
    %c0_6 = arith.constant 0 : index
    %4 = vector.load %arg3[%c0_5, %c0_6] : memref<128x128xf32, #tpu.memory_space<vmem>>, vector<128x128xf32>
    %cst_7 = arith.constant dense<0.000000e+00> : vector<8x128xf32>
    %5 = tpu.matmul %3, %4, %cst_7 {dimension_numbers = #tpu.dot_dimension_numbers<[1], [0], [0], [1], [0, 0, 1, 1], [], []>} : vector<8x128xf32>, vector<128x128xf32>, vector<8x128xf32> -> vector<8x128xf32>
    %6 = arith.addf %2, %5 : vector<8x128xf32>
    %c0_8 = arith.constant 0 : index
    %c0_9 = arith.constant 0 : index
    %7 = vector.load %arg4[%c0_8, %c0_9] : memref<1x128xf32, #tpu.memory_space<vmem>>, vector<1x128xf32>
    %8 = vector.broadcast %7 : vector<1x128xf32> to vector<8x128xf32>
    %9 = arith.addf %6, %8 : vector<8x128xf32>
    %10 = tpu.iota {dimensions = array<i32: 1>} : vector<8x128xi32>
    %c32_i32 = arith.constant 32 : i32
    %11 = vector.broadcast %c32_i32 : i32 to vector<8x128xi32>
    %12 = arith.cmpi sge, %10, %11 : vector<8x128xi32>
    %c40_i32 = arith.constant 40 : i32
    %13 = vector.broadcast %c40_i32 : i32 to vector<8x128xi32>
    %14 = arith.cmpi slt, %10, %13 : vector<8x128xi32>
    %15 = arith.andi %12, %14 : vector<8x128xi1>
    %c32_i32_10 = arith.constant 32 : i32
    %16 = vector.broadcast %c32_i32_10 : i32 to vector<8x128xi32>
    %17 = arith.cmpi slt, %10, %16 : vector<8x128xi32>
    %cst_11 = arith.constant 0xFF800000 : f32
    %18 = vector.broadcast %cst_11 : f32 to vector<8x128xf32>
    %19 = arith.select %15, %9, %18 : vector<8x128xi1>, vector<8x128xf32>
    %cst_12 = arith.constant dense<0xFF800000> : vector<8xf32>
    %20 = vector.multi_reduction <maximumf>, %19, %cst_12 [1] : vector<8x128xf32> to vector<8xf32>
    %21 = vector.shape_cast %20 : vector<8xf32> to vector<8x1xf32>
    %22 = vector.broadcast %21 : vector<8x1xf32> to vector<8x128xf32>
    %23 = arith.subf %9, %22 : vector<8x128xf32>
    %cst_13 = arith.constant 0xFF800000 : f32
    %24 = vector.broadcast %cst_13 : f32 to vector<8x128xf32>
    %25 = arith.select %15, %23, %24 : vector<8x128xi1>, vector<8x128xf32>
    %26 = math.exp %25 : vector<8x128xf32>
    %cst_14 = arith.constant dense<0.000000e+00> : vector<8xf32>
    %27 = vector.multi_reduction <add>, %26, %cst_14 [1] : vector<8x128xf32> to vector<8xf32>
    %28 = vector.shape_cast %27 : vector<8xf32> to vector<8x1xf32>
    %29 = math.log %28 : vector<8x1xf32>
    %30 = vector.broadcast %21 : vector<8x1xf32> to vector<8x128xf32>
    %31 = arith.subf %9, %30 : vector<8x128xf32>
    %32 = vector.broadcast %29 : vector<8x1xf32> to vector<8x128xf32>
    %33 = arith.subf %31, %32 : vector<8x128xf32>
    %cst_15 = arith.constant 0.000000e+00 : f32
    %34 = vector.broadcast %cst_15 : f32 to vector<8x128xf32>
    %35 = arith.select %17, %9, %34 : vector<8x128xi1>, vector<8x128xf32>
    %36 = arith.select %15, %33, %35 : vector<8x128xi1>, vector<8x128xf32>
    %c0_16 = arith.constant 0 : index
    %c0_17 = arith.constant 0 : index
    %37 = vector.load %arg5[%c0_16, %c0_17] : memref<8x128xf32, #tpu.memory_space<vmem>>, vector<8x128xf32>
    tpu.vector_store %arg5[%c0_16, %c0_17], %36 {strides = array<i32>} : memref<8x128xf32, #tpu.memory_space<vmem>>, vector<8x128xf32>,
    return
  }
}

</mosaic_0001>

<bundles_post_ra>
// kernel: tpu_custom_call.1
= control target key start
LH: loop header
LB: loop body
LE: loop exit
PB: predicated region body
PF: predicated region fallthrough
CT: control target
= control target key end

     0   :  { %10 = vsyncpa [#allocation3], 0  ;;  %s618_s0 = inlined_call_operand.hbm [shape: f32[8,16], index: 0, kind: input, shape index: {}]   ;;  %s619_s1 = inlined_call_operand.hbm [shape: f32[8,128], index: 1, kind: input, shape index: {}]   ;;  %s620_s2 = inlined_call_operand.hbm [shape: f32[16,128], index: 2, kind: input, shape index: {}]   ;;  %s621_s3 = inlined_call_operand.hbm [shape: f32[128,128], index: 3, kind: input, shape index: {}]   ;;  %s622_s4 = inlined_call_operand.vmem [shape: f32[1,128], index: 4, kind: input, shape index: {}]   ;;  %s623_s5 = inlined_call_operand.hbm [shape: f32[8,128], index: 5, kind: output, shape index: {}]  }
   0x1   :  { %11 = vsyncpa [#allocation6], 0 }
   0x2   :  { %12 = vsyncpa [#allocation9], 0 }
   0x3   :  { %13 = vsyncpa [#allocation4], 0  ;;  %s505_s18 = smov [#allocation5]   ;;  %s506_s20 = smov [#allocation2]  }
   0x4   :  { %s30_s19 = sshll.u32 %s505_s18, 4  ;;  %s20_s21 = sshll.u32 %s506_s20, 4  ;;  %s31_s19 = int_to_ptr.vmem [resolvable:$true] %s30_s19  ;;  %s21_s21 = int_to_ptr.vmem [resolvable:$true] %s20_s21 }
   0x5   :  { %s387_s24 = scalar_lea.hbm %s619_s1, 128 }
   0x6   :  { %p388_p0 = scmp.ne.s32.totalorder %s619_s1, %s387_s24  ;;  %p391_p1 = scmp.lt.u32.totalorder %s387_s24, %s619_s1 }
   0x8   :  { %p393_p2 = pnand %p391_p1, %p388_p0 }
   0xa   :  { %396 = shalt.err (!%p393_p2)
}
   0xb   :  { %s397_s29 = scalar_lea.vmem %s31_s19, 128  ;;  %p402_p4 = scmp.lt.s32.totalorder %s31_s19, %s31_s19 }
   0xc   :  { %p398_p3 = scmp.ne.s32.totalorder %s31_s19, %s397_s29  ;;  %p403_p5 = scmp.lt.s32.totalorder %s397_s29, %s397_s29 }
   0xe   :  { %p404_p6 = por %p403_p5, %p402_p4 }
  0x10   :  { %p405_p7 = pnand %p404_p6, %p398_p3 }
  0x12   :  { %408 = shalt.err (!%p405_p7)
}
  0x13   :  { %33 = dma.hbm_to_vmem [thread:$0]  %s619_s1, 128, %s31_s19, [#allocation6]  }
  0x14   :  { %s409_s9 = scalar_lea.hbm %s618_s0, 128 }
  0x15   :  { %p410_p8 = scmp.ne.s32.totalorder %s618_s0, %s409_s9  ;;  %p413_p9 = scmp.lt.u32.totalorder %s409_s9, %s618_s0 }
  0x17   :  { %p415_p10 = pnand %p413_p9, %p410_p8 }
  0x19   :  { %418 = shalt.err (!%p415_p10)
}
  0x1a   :  { %s419_s14 = scalar_lea.vmem %s21_s21, 128  ;;  %p424_p12 = scmp.lt.s32.totalorder %s21_s21, %s21_s21 }
  0x1b   :  { %p420_p11 = scmp.ne.s32.totalorder %s21_s21, %s419_s14  ;;  %p425_p13 = scmp.lt.s32.totalorder %s419_s14, %s419_s14 }
  0x1d   :  { %p426_p0 = por %p425_p13, %p424_p12 }
  0x1f   :  { %p427_p1 = pnand %p426_p0, %p420_p11 }
  0x21   :  { %430 = shalt.err (!%p427_p1)
}
  0x22   :  { %23 = dma.hbm_to_vmem [thread:$0]  %s618_s0, 128, %s21_s21, [#allocation3]  }
  0x23   :  { %s507_s16 = smov [#allocation7]   ;;  %s431_s20 = scalar_lea.hbm %s620_s2, 256 }
  0x24   :  { %s39_s17 = sshll.u32 %s507_s16, 4  ;;  %p432_p2 = scmp.ne.s32.totalorder %s620_s2, %s431_s20  ;;  %s40_s17 = int_to_ptr.vmem [resolvable:$true] %s39_s17 }
  0x25   :  { %p435_p3 = scmp.lt.u32.totalorder %s431_s20, %s620_s2 }
  0x27   :  { %p437_p4 = pnand %p435_p3, %p432_p2 }
  0x29   :  { %440 = shalt.err (!%p437_p4)
}
  0x2a   :  { %s441_s26 = scalar_lea.vmem %s40_s17, 256  ;;  %p446_p6 = scmp.lt.s32.totalorder %s40_s17, %s40_s17 }
  0x2b   :  { %p442_p5 = scmp.ne.s32.totalorder %s40_s17, %s441_s26  ;;  %p447_p7 = scmp.lt.s32.totalorder %s441_s26, %s441_s26 }
  0x2d   :  { %p448_p8 = por %p447_p7, %p446_p6 }
  0x2f   :  { %p449_p9 = pnand %p448_p8, %p442_p5 }
  0x31   :  { %452 = shalt.err (!%p449_p9)
}
  0x32   :  { %s508_s0 = smov 128   ;;  %s509_s21 = smov 8  }
  0x33   :  { %45 = dma.hbm_to_vmem [thread:$0]  %s620_s2, 256, %s40_s17, [#allocation6], %s508_s0, %s508_s0, %s509_s21  }
  0x34   :  { %s510_s29 = smov [#allocation8]   ;;  %s453_s8 = scalar_lea.hbm %s621_s3, 2048 }
  0x35   :  { %s51_s30 = sshll.u32 %s510_s29, 4  ;;  %p454_p10 = scmp.ne.s32.totalorder %s621_s3, %s453_s8  ;;  %s52_s30 = int_to_ptr.vmem [resolvable:$true] %s51_s30 }
  0x36   :  { %p457_p11 = scmp.lt.u32.totalorder %s453_s8, %s621_s3 }
  0x38   :  { %p459_p12 = pnand %p457_p11, %p454_p10 }
  0x3a   :  { %462 = shalt.err (!%p459_p12)
}
  0x3b   :  { %s463_s13 = scalar_lea.vmem %s52_s30, 2048  ;;  %p468_p0 = scmp.lt.s32.totalorder %s52_s30, %s52_s30 }
  0x3c   :  { %p464_p13 = scmp.ne.s32.totalorder %s52_s30, %s463_s13  ;;  %p469_p1 = scmp.lt.s32.totalorder %s463_s13, %s463_s13 }
  0x3e   :  { %p470_p2 = por %p469_p1, %p468_p0 }
  0x40   :  { %p471_p3 = pnand %p470_p2, %p464_p13 }
  0x42   :  { %474 = shalt.err (!%p471_p3)
}
  0x43   :  { %57 = dma.hbm_to_vmem [thread:$0]  %s621_s3, 2048, %s52_s30, [#allocation9], %s508_s0, %s508_s0, %s509_s21  }
  0x44   :  { %497 = dma.done.wait [#allocation3], 128  }
  0x45   :  { %498 = vsyncadd [#allocation3], 4294967168 }
  0x46   :  { %499 = dma.done.wait [#allocation6], 384  }
  0x47   :  { %500 = vsyncadd [#allocation6], 4294966912 }
  0x48   :  { %501 = dma.done.wait [#allocation9], 2048  }
  0x49   :  { %502 = vsyncadd [#allocation9], 4294965248  ;;  %v511_v0 = vmov 0.0|0.0   ;;  %vm512_vm0 = vmmov 0   ;;  %v513_v1 = vmov 0.0   ;;  %v76_v2 = vld [vmem:[#allocation8] sm:$0xff]  ;;  %v244_v33 = vlaneseq }
  0x4a   :  { %346 = vmatprep.subr.bf16.mxu0 %v511_v0  ;;  %370 = vmatprep.subr.bf16.mxu1 %v511_v0  ;;  %v77_v3 = vld [vmem:[#allocation8 + $0x8] sm:$0xff]  ;;  %v78_v4 = vld [vmem:[#allocation8 + $0x10] sm:$0xff]  ;;  %v79_v6 = vld [vmem:[#allocation8 + $0x18] sm:$0xff]  ;;  %vm162_vm1 = vcmask 130048  }
  0x4b   :  { %343 = vmatprep.mubr.msk.f32.mxu1 %vm512_vm0, %v513_v1  ;;  %336 = vmatprep.mubr.msk.f32.mxu0 %vm512_vm0, %v513_v1  ;;  %v347_v5 = vpack.c.bf16 %v77_v3, %v76_v2  ;;  %v350_v7 = vpack.c.bf16 %v79_v6, %v78_v4  ;;  %v80_v8 = vld [vmem:[#allocation8 + $0x20] sm:$0xff]  ;;  %v81_v9 = vld [vmem:[#allocation8 + $0x28] sm:$0xff]  ;;  %v73_v10 = vld [vmem:[#allocation7] sm:$0xff]  ;;  %v245_v34 = vand.u32 127, %v244_v33 }
  0x4c   :  { %v74_v11 = vld [vmem:[#allocation7 + $0x8] sm:$0xff]  ;;  %v353_v13 = vpack.c.bf16 %v81_v9, %v80_v8  ;;  %v82_v14 = vld [vmem:[#allocation8 + $0x30] sm:$0xff]  ;;  %v72_v16 = vld [vmem:[#allocation2] sm:$0xff] }
  0x4d   :  { %348 = vmatpush3.bf16.msra.mxu0 %v347_v5  ;;  %v371_v12 = vpack.c.bf16 %v74_v11, %v73_v10  ;;  %v83_v15 = vld [vmem:[#allocation8 + $0x38] sm:$0xff]  ;;  %v84_v18 = vld [vmem:[#allocation8 + $0x40] sm:$0xff]  ;;  %v85_v19 = vld [vmem:[#allocation8 + $0x48] sm:$0xff]  ;;  %vm246_vm2 = vcmp.ge.s32.totalorder %v245_v34, 32  ;;  %vm247_vm3 = vcmp.lt.s32.totalorder %v245_v34, 40  ;;  %vm249_vm5 = vcmp.lt.s32.totalorder %v245_v34, 32 }
  0x4e   :  { %349 = vmatprep.subr.bf16.mxu0 %v511_v0  ;;  %v356_v17 = vpack.c.bf16 %v83_v15, %v82_v14  ;;  %v359_v20 = vpack.c.bf16 %v85_v19, %v84_v18  ;;  %v86_v21 = vld [vmem:[#allocation8 + $0x50] sm:$0xff]  ;;  %v87_v22 = vld [vmem:[#allocation8 + $0x58] sm:$0xff]  ;;  %v88_v24 = vld [vmem:[#allocation8 + $0x60] sm:$0xff] }
  0x4f   :  { %372 = vmatpush3.bf16.msra.mxu1 %v371_v12  ;;  %v362_v23 = vpack.c.bf16 %v87_v22, %v86_v21  ;;  %v89_v25 = vld [vmem:[#allocation8 + $0x68] sm:$0xff]  ;;  %v90_v27 = vld [vmem:[#allocation8 + $0x70] sm:$0xff]  ;;  %v91_v28 = vld [vmem:[#allocation8 + $0x78] sm:$0xff] }
  0x50   :  { %v365_v26 = vpack.c.bf16 %v89_v25, %v88_v24  ;;  %v368_v29 = vpack.c.bf16 %v91_v28, %v90_v27  ;;  %v75_v30 = vld [vmem:[#allocation5] sm:$0xff]  ;;  %v283_v36 = vld [vmem:[%s622_s4] ss:$0 sm:$0xff]  ;;  %vm596_vm4 = vmand %vm246_vm2, %vm247_vm3  ;;  %s514_s4 = smov [#allocation10]  }
  0x51   :  { %351 = vmatpush3.bf16.msra.mxu0 %v350_v7  ;;  %s271_s15 = sshll.u32 %s514_s4, 4  ;;  %s272_s15 = int_to_ptr.vmem [resolvable:$true] %s271_s15 }
  0x52   :  { %352 = vmatprep.subr.bf16.mxu0 %v511_v0  ;;  %344 = vmatmul.mubr.msk.f32.vlgmr.msra.gmra.mrb[0].mxu1 %vm162_vm1, %v72_v16  ;;  %s475_s16 = scalar_lea.vmem %s272_s15, 128  ;;  %p480_p5 = scmp.lt.s32.totalorder %s272_s15, %s272_s15 }
  0x53   :  { %p476_p4 = scmp.ne.s32.totalorder %s272_s15, %s475_s16  ;;  %p481_p6 = scmp.lt.s32.totalorder %s475_s16, %s475_s16 }
  0x55   :  { %354 = vmatpush3.bf16.msra.mxu0 %v353_v13  ;;  %p482_p7 = por %p481_p6, %p480_p5 }
  0x56   :  { %355 = vmatprep.subr.bf16.mxu0 %v511_v0 }
  0x57   :  { %p483_p8 = pnand %p482_p7, %p476_p4 }
  0x59   :  { %357 = vmatpush3.bf16.msra.mxu0 %v356_v17 }
  0x5a   :  { %358 = vmatprep.subr.bf16.mxu0 %v511_v0 }
  0x5d   :  { %360 = vmatpush3.bf16.msra.mxu0 %v359_v20 }
  0x5e   :  { %361 = vmatprep.subr.bf16.mxu0 %v511_v0 }
  0x61   :  { %363 = vmatpush3.bf16.msra.mxu0 %v362_v23 }
  0x62   :  { %364 = vmatprep.subr.bf16.mxu0 %v511_v0 }
  0x65   :  { %366 = vmatpush3.bf16.msra.mxu0 %v365_v26 }
  0x66   :  { %367 = vmatprep.subr.bf16.mxu0 %v511_v0 }
  0x69   :  { %369 = vmatpush3.bf16.msra.mxu0 %v368_v29 }
  0x6c   :  { %337 = vmatmul.mubr.f32.vlgmr.msra.gmra.mrb[0].mxu0 %v75_v30 }
 0x125   :  { %v232_v31 = vpop.f32.mrb[0].mxu1 }
 0x126   :  { %v345_v32 = vpop.f32.mrb[1].mxu1 }
 0x13f   :  { %v158_v35 = vpop.f32.mrb[0].mxu0 }
 0x140   :  { %v233_v37 = vadd.f32 %v232_v31, %v158_v35  ;;  %v338_v38 = vpop.f32.mrb[1].mxu0 }
 0x142   :  { %v243_v40 = vadd.f32 %v283_v36, %v233_v37 }
 0x144   :  { %v250_v41 = vsel %vm596_vm4, %v243_v40, -inf  ;;  %v262_v51 = vsel %vm249_vm5, %v243_v40, 0.0 }
 0x145   :  { %251 = vmax.xlane.f32.xlu0 %v250_v41 }
 0x1d2   :  { %v252_v42 = vpop.xlane.xlu0 %251 }
 0x1d3   :  { %v253_v43 = vsub.f32 %v243_v40, %v252_v42 }
 0x1d5   :  { %v254_v44 = vsel %vm596_vm4, %v253_v43, -inf }
 0x1d6   :  { %v255_v45 = vmul.f32 1.442695, %v254_v44 }
 0x1d8   :  { %383 = vpow2.f32 %v255_v45 }
 0x1e2   :  { %v384_v46 = vpop.eup %383 }
 0x1e3   :  { %257 = vadd.xlane.f32.xlu0 %v384_v46 }
 0x270   :  { %v258_v47 = vpop.xlane.xlu0 %257 }
 0x271   :  { %385 = vlog2.f32 %v258_v47 }
 0x27b   :  { %v386_v48 = vpop.eup %385 }
 0x27c   :  { %v260_v49 = vmul.f32 0.6931472, %v386_v48 }
 0x27e   :  { %v261_v50 = vsub.f32 %v253_v43, %v260_v49 }
 0x280   :  { %v263_v52 = vsel %vm596_vm4, %v261_v50, %v262_v51 }
 0x281   :  { %264 = vst [vmem:[#allocation10] sm:$0xff] %v263_v52 }
 0x282   :  { %486 = shalt.err (!%p483_p8)
}
 0x283   :  { %s487_s19 = scalar_lea.hbm %s623_s5, 128 }
 0x284   :  { %p488_p9 = scmp.ne.s32.totalorder %s623_s5, %s487_s19  ;;  %p491_p10 = scmp.lt.u32.totalorder %s487_s19, %s623_s5 }
 0x286   :  { %p493_p11 = pnand %p491_p10, %p488_p9 }
 0x288   :  { %496 = shalt.err (!%p493_p11)
}
 0x289   :  { %274 = dma.vmem_to_hbm [thread:$0]  %s272_s15, 128, %s623_s5, [#allocation4]  }
 0x28a   :  { %503 = dma.done.wait [#allocation4], 128  }
 0x28b   :  { %504 = vsyncadd [#allocation4], 4294967168 }
 0x28c   :  { %278 = vsyncpa [#allocation3], 1 }
 0x28d   :  { %279 = vsyncpa [#allocation6], 1 }
 0x28e   :  { %280 = vsyncpa [#allocation9], 1 }
 0x28f   :  { %281 = vsyncpa [#allocation4], 1 }

</bundles_post_ra>
